<compile_context>
chip_gen: v7x
topology: tpu7x:2x2x1
jax: 0.10.0
libtpu: 0.0.40
codegen_flags: <defaults>
</compile_context>

<pallas_src>
import functools

import jax
import jax.numpy as jnp
from jax.experimental import pallas as pl
from jax.experimental.pallas import tpu as pltpu


def _round_up(x, m):
    return (x + m - 1) // m * m


def attention_kernel(dec_ref, enc_ref, w_ref, b_ref, out_ref, *, t_actual):
    """Fused attention-score kernel for one batch tile.

    dec_ref: (TB, H)       decoder hidden state (broadcast over T)
    enc_ref: (TB, T, H)    encoder outputs (T padded to a multiple of 8)
    w_ref:   (H, H)        Linear weight, pre-transposed (x @ w == x @ W^T)
    b_ref:   (1, H)        Linear bias (f32)
    out_ref: (TB, T)       softmax attention weights over T (f32)
    """
    TB, T, H = enc_ref.shape

    # Per-row pre-projection: d = dec @ W + b  (bf16 operands, f32 MXU accumulation).
    d = jnp.dot(dec_ref[...], w_ref[...], preferred_element_type=jnp.float32)
    d = d + b_ref[...]                                       # (TB, H) f32

    # Encoder projection: one MXU matmul over the whole tile.  T is padded to a
    # multiple of 8 in the wrapper, so this merge is a layout-preserving view.
    enc2 = enc_ref[...].reshape(TB * T, H)
    proj = jnp.dot(enc2, w_ref[...], preferred_element_type=jnp.float32)
    # (dec + enc) @ W + b  ==  enc @ W + (dec @ W + b): no (TB,T,H) pre-add temp.
    proj = proj.reshape(TB, T, H) + d[:, None, :]            # f32

    energy = jnp.tanh(proj)                                  # EUP, f32
    scores = jnp.sum(energy, axis=-1)                        # (TB, T), XLU reduce over H

    if t_actual < T:                                         # mask padded time steps
        tids = jax.lax.broadcasted_iota(jnp.int32, (TB, T), 1)
        scores = jnp.where(tids < t_actual, scores, -1e30)

    # Numerically-stable softmax over the time axis (all f32).
    m = jnp.max(scores, axis=-1, keepdims=True)
    e = jnp.exp(scores - m)
    out_ref[...] = (e / jnp.sum(e, axis=-1, keepdims=True)).astype(out_ref.dtype)


def _vmem_budget_bytes():
    """~75% of physical VMEM: ~48 MiB on v7x, ~96 MiB on v5e/v6e."""
    try:
        cap = pltpu.get_tpu_info().vmem_capacity_bytes
    except Exception:
        cap = 64 * 1024 * 1024        # conservative fallback (v7x per-core VMEM)
    return int(cap) * 3 // 4


def _pick_batch_tile(B, T_pad, H, in_bytes, budget_bytes):
    """VMEM-budget-derived batch tile (multiple of 8)."""
    # Fixed residency: W (single-buffered) + bias + slack for compiler scratch.
    fixed = H * H * in_bytes + H * 4 + (1 << 20)
    # Per batch row: double-buffered enc + dec blocks and ~2 f32 tile-sized temps.
    per_row = T_pad * H * (2 * in_bytes + 8) + H * (2 * in_bytes + 8) + T_pad * 8
    tb = (budget_bytes - fixed) // max(per_row, 1)
    tb = max(8, (int(tb) // 8) * 8)
    tb = min(tb, _round_up(B, 8))
    if B >= 16:
        # Keep the grid >= 2 steps so both v7x TensorCores get work.
        tb = min(tb, _round_up((B + 1) // 2, 8))
    return tb


def attention_forward(decoder_hidden, encoder_outputs, params):
    """decoder_hidden: (B, 1, H) or (B, H); encoder_outputs: (B, T, H).

    Inputs are streamed in their own dtype (bf16 recommended: the kernel is
    HBM-bandwidth bound); accumulation/softmax math is f32 inside the kernel.
    """
    B, T, H = encoder_outputs.shape
    dec = decoder_hidden.reshape(B, H)            # sublane-dense 2-D decoder block
    enc = encoder_outputs
    w_t = params["w_t"]                           # (H, H), pre-transposed, enc dtype
    b = params["b"].astype(jnp.float32)           # (1, H)

    in_bytes = jnp.dtype(enc.dtype).itemsize
    budget = _vmem_budget_bytes()

    T_pad = _round_up(T, 8)                       # keeps the in-kernel merge a view
    TB = _pick_batch_tile(B, T_pad, H, in_bytes, budget)
    B_pad = _round_up(B, TB)

    if T_pad != T:
        enc = jnp.pad(enc, ((0, 0), (0, T_pad - T), (0, 0)))
    if B_pad != B:
        enc = jnp.pad(enc, ((0, B_pad - B), (0, 0), (0, 0)))
        dec = jnp.pad(dec, ((0, B_pad - B), (0, 0)))

    grid = (B_pad // TB,)

    cost = pl.CostEstimate(
        flops=int(2 * B_pad * (T_pad + 1) * H * H),
        transcendentals=int(B_pad * T_pad * (H + 1)),
        bytes_accessed=int((enc.size + dec.size + w_t.size) * in_bytes
                           + b.size * 4 + B_pad * T_pad * 4),
    )

    kernel = functools.partial(attention_kernel, t_actual=T)

    out = pl.pallas_call(
        kernel,
        out_shape=jax.ShapeDtypeStruct((B_pad, T_pad), jnp.float32),
        grid=grid,
        in_specs=[
            pl.BlockSpec((TB, H), lambda i: (i, 0)),            # decoder hidden tile
            pl.BlockSpec((TB, T_pad, H), lambda i: (i, 0, 0)),  # encoder outputs tile
            pl.BlockSpec((H, H), lambda i: (0, 0),              # weight: resident, 1 buffer
                         pipeline_mode=pl.Buffered(1)),
            pl.BlockSpec((1, H), lambda i: (0, 0),              # bias: resident, 1 buffer
                         pipeline_mode=pl.Buffered(1)),
        ],
        out_specs=pl.BlockSpec((TB, T_pad), lambda i: (i, 0)),
        compiler_params=pltpu.CompilerParams(
            dimension_semantics=("parallel",),
            vmem_limit_bytes=budget,
        ),
        cost_estimate=cost,
    )(dec, enc, w_t, b)

    return out[:B, :T]


def init_params(key, hidden_size, dtype=jnp.bfloat16):
    # PyTorch nn.Linear init: U(-1/sqrt(H), 1/sqrt(H)) for weight and bias.
    s = 1.0 / (hidden_size ** 0.5)
    kw, kb = jax.random.split(key)
    return {
        # stored pre-transposed: (in, out) so that x @ w_t == x @ W^T
        "w_t": jax.random.uniform(
            kw, (hidden_size, hidden_size), jnp.float32, -s, s).astype(dtype),
        "b": jax.random.uniform(kb, (1, hidden_size), jnp.float32, -s, s),
    }


def _reference(decoder_hidden, encoder_outputs, params):
    # Pure-JAX f32 reference of the PyTorch forward (same inputs as the kernel).
    x = decoder_hidden.astype(jnp.float32) + encoder_outputs.astype(jnp.float32)
    energy = jnp.tanh(jnp.dot(x, params["w_t"].astype(jnp.float32))
                      + params["b"].astype(jnp.float32))
    scores = jnp.sum(energy, axis=2)
    return jax.nn.softmax(scores, axis=1)


if __name__ == "__main__":
    hidden_size = 32
    B, T = 2, 8

    key = jax.random.PRNGKey(0)
    kp, kd, ke = jax.random.split(key, 3)
    params = init_params(kp, hidden_size, dtype=jnp.bfloat16)

    # bf16 activations: halves HBM traffic for the bandwidth-bound kernel; the
    # kernel keeps all accumulation / softmax math in f32.
    decoder_hidden = jax.random.normal(
        kd, (B, 1, hidden_size), jnp.float32).astype(jnp.bfloat16)
    encoder_outputs = jax.random.normal(
        ke, (B, T, hidden_size), jnp.float32).astype(jnp.bfloat16)

    attn = attention_forward(decoder_hidden, encoder_outputs, params)
    jax.block_until_ready(attn)

    ref = _reference(decoder_hidden, encoder_outputs, params)
    assert attn.shape == (B, T)
    assert bool(jnp.allclose(attn, ref, atol=1e-3, rtol=1e-3))
    assert bool(jnp.allclose(jnp.sum(attn, axis=1), jnp.ones((B,)), atol=1e-4))
    print("KERNEL_OK")
</pallas_src>

<mosaic_0001>
module attributes {stable_mosaic.version = 11 : i64} {
  func.func @attention_kernel(%arg0: i32, %arg1: memref<8x32xbf16, #tpu.memory_space<vmem>>, %arg2: memref<8x8x32xbf16, #tpu.memory_space<vmem>>, %arg3: memref<32x32xbf16, #tpu.memory_space<vmem>>, %arg4: memref<1x32xf32, #tpu.memory_space<vmem>>, %arg5: memref<8x8xf32, #tpu.memory_space<vmem>>) attributes {dimension_semantics = [#tpu.dimension_semantics<parallel>], iteration_bounds = array<i64: 1>, scalar_prefetch = 0 : i64, scratch_operands = 0 : i64, tpu.core_type = #tpu.core_type<tc>, window_params = [{transform_indices = @transform_0, window_bounds = array<i64: 8, 32>}, {transform_indices = @transform_1, window_bounds = array<i64: 8, 8, 32>}, {pipeline_mode = #tpu.pipeline_mode<synchronous>, transform_indices = @transform_2, window_bounds = array<i64: 32, 32>}, {pipeline_mode = #tpu.pipeline_mode<synchronous>, transform_indices = @transform_3, window_bounds = array<i64: 1, 32>}, {transform_indices = @transform_4, window_bounds = array<i64: 8, 8>}]} {
    %c0 = arith.constant 0 : index
    %c0_0 = arith.constant 0 : index
    %0 = vector.load %arg1[%c0, %c0_0] : memref<8x32xbf16, #tpu.memory_space<vmem>>, vector<8x32xbf16>
    %c0_1 = arith.constant 0 : index
    %c0_2 = arith.constant 0 : index
    %1 = vector.load %arg3[%c0_1, %c0_2] : memref<32x32xbf16, #tpu.memory_space<vmem>>, vector<32x32xbf16>
    %cst = arith.constant dense<0.000000e+00> : vector<8x32xf32>
    %2 = tpu.matmul %0, %1, %cst {dimension_numbers = #tpu.dot_dimension_numbers<[1], [0], [0], [1], [0, 0, 1, 1], [], []>} : vector<8x32xbf16>, vector<32x32xbf16>, vector<8x32xf32> -> vector<8x32xf32>
    %c0_3 = arith.constant 0 : index
    %c0_4 = arith.constant 0 : index
    %3 = vector.load %arg4[%c0_3, %c0_4] : memref<1x32xf32, #tpu.memory_space<vmem>>, vector<1x32xf32>
    %4 = vector.broadcast %3 : vector<1x32xf32> to vector<8x32xf32>
    %5 = arith.addf %2, %4 : vector<8x32xf32>
    %c0_5 = arith.constant 0 : index
    %c0_6 = arith.constant 0 : index
    %c0_7 = arith.constant 0 : index
    %6 = vector.load %arg2[%c0_5, %c0_6, %c0_7] : memref<8x8x32xbf16, #tpu.memory_space<vmem>>, vector<8x8x32xbf16>
    %7 = vector.shape_cast %6 : vector<8x8x32xbf16> to vector<64x32xbf16>
    %c0_8 = arith.constant 0 : index
    %c0_9 = arith.constant 0 : index
    %8 = vector.load %arg3[%c0_8, %c0_9] : memref<32x32xbf16, #tpu.memory_space<vmem>>, vector<32x32xbf16>
    %cst_10 = arith.constant dense<0.000000e+00> : vector<64x32xf32>
    %9 = tpu.matmul %7, %8, %cst_10 {dimension_numbers = #tpu.dot_dimension_numbers<[1], [0], [0], [1], [0, 0, 1, 1], [], []>} : vector<64x32xbf16>, vector<32x32xbf16>, vector<64x32xf32> -> vector<64x32xf32>
    %10 = vector.shape_cast %9 : vector<64x32xf32> to vector<8x8x32xf32>
    %11 = vector.shape_cast %5 : vector<8x32xf32> to vector<8x1x32xf32>
    %12 = vector.broadcast %11 : vector<8x1x32xf32> to vector<8x8x32xf32>
    %13 = arith.addf %10, %12 : vector<8x8x32xf32>
    %14 = math.tanh %13 : vector<8x8x32xf32>
    %cst_11 = arith.constant dense<0.000000e+00> : vector<8x8xf32>
    %15 = vector.multi_reduction <add>, %14, %cst_11 [2] : vector<8x8x32xf32> to vector<8x8xf32>
    %cst_12 = arith.constant dense<0xFF800000> : vector<8xf32>
    %16 = vector.multi_reduction <maximumf>, %15, %cst_12 [1] : vector<8x8xf32> to vector<8xf32>
    %17 = vector.shape_cast %16 : vector<8xf32> to vector<8x1xf32>
    %18 = vector.broadcast %17 : vector<8x1xf32> to vector<8x8xf32>
    %19 = arith.subf %15, %18 : vector<8x8xf32>
    %20 = math.exp %19 : vector<8x8xf32>
    %cst_13 = arith.constant dense<0.000000e+00> : vector<8xf32>
    %21 = vector.multi_reduction <add>, %20, %cst_13 [1] : vector<8x8xf32> to vector<8xf32>
    %22 = vector.shape_cast %21 : vector<8xf32> to vector<8x1xf32>
    %23 = vector.broadcast %22 : vector<8x1xf32> to vector<8x8xf32>
    %24 = arith.divf %20, %23 : vector<8x8xf32>
    %c0_14 = arith.constant 0 : index
    %c0_15 = arith.constant 0 : index
    %25 = vector.load %arg5[%c0_14, %c0_15] : memref<8x8xf32, #tpu.memory_space<vmem>>, vector<8x8xf32>
    tpu.vector_store %arg5[%c0_14, %c0_15], %24 {strides = array<i32>} : memref<8x8xf32, #tpu.memory_space<vmem>>, vector<8x8xf32>,
    return
  }
  func.func @transform_0(%arg0: i32) -> (i32, i32) {
    %c0_i32 = arith.constant 0 : i32
    %c0_i32_0 = arith.constant 0 : i32
    return %arg0, %c0_i32 : i32, i32
  }
  func.func @transform_1(%arg0: i32) -> (i32, i32, i32) {
    %c0_i32 = arith.constant 0 : i32
    %c0_i32_0 = arith.constant 0 : i32
    %c0_i32_1 = arith.constant 0 : i32
    return %arg0, %c0_i32, %c0_i32_0 : i32, i32, i32
  }
  func.func @transform_2(%arg0: i32) -> (i32, i32) {
    %c0_i32 = arith.constant 0 : i32
    %c0_i32_0 = arith.constant 0 : i32
    %c0_i32_1 = arith.constant 0 : i32
    return %c0_i32, %c0_i32_0 : i32, i32
  }
  func.func @transform_3(%arg0: i32) -> (i32, i32) {
    %c0_i32 = arith.constant 0 : i32
    %c0_i32_0 = arith.constant 0 : i32
    %c0_i32_1 = arith.constant 0 : i32
    return %c0_i32, %c0_i32_0 : i32, i32
  }
  func.func @transform_4(%arg0: i32) -> (i32, i32) {
    %c0_i32 = arith.constant 0 : i32
    %c0_i32_0 = arith.constant 0 : i32
    return %arg0, %c0_i32 : i32, i32
  }
}

</mosaic_0001>

<bundles_post_ra>
// kernel: tpu_custom_call.1
= control target key start
LH: loop header
LB: loop body
LE: loop exit
PB: predicated region body
PF: predicated region fallthrough
CT: control target
= control target key end

     0   :  { %9 = vsyncpa [#allocation3], 0  ;;  %s1146_s0 = inlined_call_operand.hbm [shape: bf16[8,32], index: 0, kind: input, shape index: {}]   ;;  %s1147_s1 = inlined_call_operand.hbm [shape: bf16[8,8,32], index: 1, kind: input, shape index: {}]   ;;  %s1148_s2 = inlined_call_operand.hbm [shape: bf16[32,32], index: 2, kind: input, shape index: {}]   ;;  %s1149_s3 = inlined_call_operand.vmem [shape: f32[1,32], index: 3, kind: input, shape index: {}]   ;;  %s1150_s4 = inlined_call_operand.hbm [shape: f32[8,8], index: 4, kind: output, shape index: {}]  }
   0x1   :  { %10 = vsyncpa [#allocation6], 0 }
   0x2   :  { %11 = vsyncpa [#allocation4], 0  ;;  %s909_s15 = smov [#allocation5]   ;;  %s815_s19 = scalar_lea.hbm %s1147_s1, 512 }
   0x3   :  { %s27_s16 = sshll.u32 %s909_s15, 4  ;;  %p816_p0 = scmp.ne.s32.totalorder %s1147_s1, %s815_s19  ;;  %s28_s16 = int_to_ptr.vmem [resolvable:$true] %s27_s16 }
   0x4   :  { %p819_p1 = scmp.lt.u32.totalorder %s815_s19, %s1147_s1 }
   0x6   :  { %p821_p2 = pnand %p819_p1, %p816_p0 }
   0x8   :  { %824 = shalt.err (!%p821_p2)
}
   0x9   :  { %s825_s24 = scalar_lea.vmem %s28_s16, 512  ;;  %p830_p4 = scmp.lt.s32.totalorder %s28_s16, %s28_s16 }
   0xa   :  { %p826_p3 = scmp.ne.s32.totalorder %s28_s16, %s825_s24  ;;  %p831_p5 = scmp.lt.s32.totalorder %s825_s24, %s825_s24 }
   0xc   :  { %p832_p6 = por %p831_p5, %p830_p4 }
   0xe   :  { %p833_p7 = pnand %p832_p6, %p826_p3 }
  0x10   :  { %836 = shalt.err (!%p833_p7)
}
  0x11   :  { %s910_s25 = smov 64   ;;  %s911_s26 = smov 4  }
  0x12   :  { %33 = dma.hbm_to_vmem [thread:$0]  %s1147_s1, 512, %s28_s16, [#allocation6], %s910_s25, %s910_s25, %s911_s26  }
  0x13   :  { %s912_s29 = smov [#allocation2]   ;;  %s913_s5 = smov [#allocation7]  }
  0x14   :  { %s18_s30 = sshll.u32 %s912_s29, 4  ;;  %s39_s6 = sshll.u32 %s913_s5, 4  ;;  %s19_s30 = int_to_ptr.vmem [resolvable:$true] %s18_s30  ;;  %s40_s6 = int_to_ptr.vmem [resolvable:$true] %s39_s6 }
  0x15   :  { %s837_s9 = scalar_lea.hbm %s1146_s0, 64 }
  0x16   :  { %p838_p8 = scmp.ne.s32.totalorder %s1146_s0, %s837_s9  ;;  %p841_p9 = scmp.lt.u32.totalorder %s837_s9, %s1146_s0 }
  0x18   :  { %p843_p10 = pnand %p841_p9, %p838_p8 }
  0x1a   :  { %846 = shalt.err (!%p843_p10)
}
  0x1b   :  { %s847_s1 = scalar_lea.vmem %s19_s30, 64  ;;  %p852_p12 = scmp.lt.s32.totalorder %s19_s30, %s19_s30 }
  0x1c   :  { %p848_p11 = scmp.ne.s32.totalorder %s19_s30, %s847_s1  ;;  %p853_p13 = scmp.lt.s32.totalorder %s847_s1, %s847_s1 }
  0x1e   :  { %p854_p0 = por %p853_p13, %p852_p12 }
  0x20   :  { %p855_p1 = pnand %p854_p0, %p848_p11 }
  0x22   :  { %858 = shalt.err (!%p855_p1)
}
  0x23   :  { %21 = dma.hbm_to_vmem [thread:$0]  %s1146_s0, 64, %s19_s30, [#allocation3]  }
  0x24   :  { %s859_s18 = scalar_lea.hbm %s1148_s2, 256 }
  0x25   :  { %p860_p2 = scmp.ne.s32.totalorder %s1148_s2, %s859_s18  ;;  %p863_p3 = scmp.lt.u32.totalorder %s859_s18, %s1148_s2 }
  0x27   :  { %p865_p4 = pnand %p863_p3, %p860_p2 }
  0x29   :  { %868 = shalt.err (!%p865_p4)
}
  0x2a   :  { %s869_s23 = scalar_lea.vmem %s40_s6, 256  ;;  %p874_p6 = scmp.lt.s32.totalorder %s40_s6, %s40_s6 }
  0x2b   :  { %p870_p5 = scmp.ne.s32.totalorder %s40_s6, %s869_s23  ;;  %p875_p7 = scmp.lt.s32.totalorder %s869_s23, %s869_s23 }
  0x2d   :  { %p876_p8 = por %p875_p7, %p874_p6 }
  0x2f   :  { %p877_p9 = pnand %p876_p8, %p870_p5 }
  0x31   :  { %880 = shalt.err (!%p877_p9)
}
  0x32   :  { %45 = dma.hbm_to_vmem [thread:$0]  %s1148_s2, 256, %s40_s6, [#allocation6], %s910_s25, %s910_s25, %s911_s26  }
  0x33   :  { %903 = dma.done.wait [#allocation3], 64  }
  0x34   :  { %904 = vsyncadd [#allocation3], 4294967232 }
  0x35   :  { %905 = dma.done.wait [#allocation6], 768  }
  0x36   :  { %906 = vsyncadd [#allocation6], 4294966528  ;;  %v914_v0 = vmov 0.0   ;;  %vm915_vm0 = vmmov 0   ;;  %v761_v1 = vld [vmem:[#allocation7] sm:$0xff]   ;;  %v762_v2 = vld [vmem:[#allocation7 + $0x8] sm:$0xff]   ;;  %v236_v10 = vlaneseq }
  0x37   :  { %729 = vmatprep.subr.bf16.mxu0 %v914_v0  ;;  %733 = vmatprep.mubr.msk.bf16.mxu0 %vm915_vm0, %v914_v0  ;;  %vm82_vm1 = vcmask 261120   ;;  %v763_v3 = vld [vmem:[#allocation5] sm:$0xff]   ;;  %v58_v4 = vld [vmem:[#allocation2] sm:$0xf]  ;;  %v764_v5 = vld [vmem:[#allocation5 + $0x8] sm:$0xff]   ;;  %vm403_vm2 = vcmask 1041409  }
  0x38   :  { %730 = vmatpush3.bf16.msra.mxu0 %v761_v1  ;;  %737 = vmatprep.subr.bf16.mxu1 %v761_v1  ;;  %v765_v6 = vld [vmem:[#allocation5 + $0x10] sm:$0xff]   ;;  %v766_v7 = vld [vmem:[#allocation5 + $0x18] sm:$0xff]   ;;  %v916_v8 = vmov 1966171168   ;;  %v992_v12 = vshrl.u32 %v236_v10, 7  ;;  %vm405_vm3 = vcmask 1042434  }
  0x39   :  { %738 = vmatpush3.bf16.msra.mxu1 %v761_v1  ;;  %731 = vmatprep.subr.bf16.mxu0 %v914_v0  ;;  %v234_v9 = vunpack.c.l.s4 %v916_v8  ;;  %v708_v13 = vld [vmem:[%s1149_s3] ss:$0 sm:$0xff]  ;;  %vm407_vm4 = vcmask 1043459   ;;  %vm409_vm5 = vcmask 1044484   ;;  %vm411_vm6 = vcmask 1045509   ;;  %s918_s3 = smov [#allocation8]  }
  0x3a   :  { %739 = vmatprep.subr.bf16.mxu1 %v762_v2  ;;  %741 = vmatprep.mubr.msk.bf16.mxu1 %vm82_vm1, %v763_v3  ;;  %v999_v24 = vsub.s32 0, %v992_v12  ;;  %vm413_vm7 = vcmask 1046534   ;;  %vm415_vm8 = vcmask 1047559   ;;  %vm418_vm9 = vcmask 64512   ;;  %s698_s26 = sshll.u32 %s918_s3, 4  ;;  %s699_s26 = int_to_ptr.vmem [resolvable:$true] %s698_s26 }
  0x3b   :  { %v235_v11 = vunpack.c.0.s8 %v234_v9  ;;  %s881_s27 = scalar_lea.vmem %s699_s26, 128  ;;  %p886_p11 = scmp.lt.s32.totalorder %s699_s26, %s699_s26 }
  0x3c   :  { %732 = vmatpush3.bf16.msra.mxu0 %v762_v2  ;;  %p882_p10 = scmp.ne.s32.totalorder %s699_s26, %s881_s27  ;;  %p887_p12 = scmp.lt.s32.totalorder %s881_s27, %s881_s27 }
  0x3d   :  { %740 = vmatpush3.bf16.msra.mxu1 %v762_v2  ;;  %v238_v14 = vsub.s32 %v235_v11, %v992_v12  ;;  %v370_v11 = vand.u32 127, %v236_v10 }
  0x3e   :  { %p888_p13 = por %p887_p12, %p886_p11 }
  0x3f   :  { %734 = vmatmul.mubr.msk.bf16.vlgmr.msra.gmra.mrb[0].mxu0 %vm82_vm1, %v58_v4 }
  0x40   :  { %742 = vmatmul.mubr.msk.bf16.vlgmr.msra.gmra.mrb[0].mxu1 %vm82_vm1, %v764_v5  ;;  %p889_p0 = pnand %p888_p13, %p882_p10 }
  0x41   :  { %745 = vmatprep.mubr.msk.bf16.mxu1 %vm82_vm1, %v765_v6 }
  0x48   :  { %746 = vmatmul.mubr.msk.bf16.gmra.mrb[4].mxu1 %vm82_vm1, %v766_v7 }
 0x112   :  { %v120_v15 = vpop.f32.mrb[0].mxu0 }
 0x113   :  { %v121_v16 = vadd.f32 %v708_v13, %v120_v15  ;;  %v735_v17 = vpop.f32.mrb[1].mxu0  ;;  %v743_v18 = vpop.f32.mrb[0].mxu1 }
 0x114   :  { %v123_v19 = vpop.f32.mrb[2].mxu0  ;;  %v200_v20 = vpop.f32.mrb[1].mxu1 }
 0x115   :  { %v232_v21 = vcombine.high %v121_v16, %v121_v16  ;;  %v239_v22 = vrot.slane %v121_v16, %v238_v14  ;;  %v736_v23 = vpop.f32.mrb[3].mxu0  ;;  %v744_v25 = vpop.f32.mrb[2].mxu1 }
 0x116   :  { %v203_v26 = vpop.f32.mrb[3].mxu1 }
 0x117   :  { %v246_v27 = vrot.slane %v232_v21, %v238_v14  ;;  %v247_v28 = vcombine.high %v239_v22, %v239_v22  ;;  %v255_v29 = vrot.slane %v239_v22, %v238_v14 }
 0x119   :  { %v248_v30 = vcombine.high %v246_v27, %v246_v27  ;;  %v277_v31 = vcombine.high %v255_v29, %v255_v29  ;;  %v284_v32 = vrot.slane %v255_v29, %v999_v24  ;;  %v269_v33 = vrot.slane %v247_v28, %v238_v14 }
 0x11a   :  { %v262_v34 = vrot.slane %v246_v27, %v238_v14 }
 0x11b   :  { %v292_v35 = vrot.slane %v277_v31, %v999_v24  ;;  %v321_v36 = vadd.f32 %v284_v32, %v200_v20  ;;  %v279_v37 = vcombine.high %v269_v33, %v269_v33  ;;  %v288_v38 = vrot.slane %v269_v33, %v999_v24  ;;  %v747_v39 = vpop.f32.mrb[4].mxu1 }
 0x11c   :  { %v278_v40 = vcombine.high %v262_v34, %v262_v34  ;;  %v216_v41 = vpop.f32.mrb[5].mxu1  ;;  %v300_v42 = vrot.slane %v262_v34, %v999_v24  ;;  %v276_v43 = vrot.slane %v248_v30, %v238_v14  ;;  %v1019_v14 = vsub.s32 %v370_v11, %v992_v12 }
 0x11d   :  { %v323_v44 = vadd.f32 %v743_v18, %v292_v35  ;;  %767 = vtanh.f32 %v321_v36  ;;  %v296_v45 = vrot.slane %v279_v37, %v999_v24  ;;  %v322_v46 = vadd.f32 %v288_v38, %v203_v26  ;;  %v748_v47 = vpop.f32.mrb[6].mxu1 }
 0x11e   :  { %v308_v48 = vrot.slane %v278_v40, %v999_v24  ;;  %v325_v49 = vadd.f32 %v300_v42, %v216_v41  ;;  %v280_v50 = vcombine.high %v276_v43, %v276_v43  ;;  %v219_v51 = vpop.f32.mrb[7].mxu1  ;;  %v304_v52 = vrot.slane %v276_v43, %v999_v24 }
 0x11f   :  { %769 = vtanh.f32 %v323_v44  ;;  %v324_v53 = vadd.f32 %v744_v25, %v296_v45  ;;  %v917_v38 = vmov 0   ;;  %v433_v40 = vsub.s32 2, %v992_v12 }
 0x120   :  { %771 = vtanh.f32 %v322_v46  ;;  %v327_v54 = vadd.f32 %v747_v39, %v308_v48  ;;  %v312_v55 = vrot.slane %v280_v50, %v999_v24  ;;  %v326_v56 = vadd.f32 %v304_v52, %v219_v51  ;;  %760 = vset.pattern.permute.xlu0 %v917_v38  ;;  %759 = vset.pattern.permute.xlu1 %v917_v38 }
 0x121   :  { %773 = vtanh.f32 %v324_v53  ;;  %v429_v39 = vsub.s32 1, %v992_v12  ;;  %v437_v41 = vsub.s32 3, %v992_v12  ;;  %v441_v46 = vsub.s32 4, %v992_v12 }
 0x122   :  { %v328_v57 = vadd.f32 %v748_v47, %v312_v55  ;;  %775 = vtanh.f32 %v325_v49  ;;  %v445_v53 = vsub.s32 5, %v992_v12 }
 0x123   :  { %777 = vtanh.f32 %v326_v56 }
 0x124   :  { %779 = vtanh.f32 %v327_v54 }
 0x125   :  { %781 = vtanh.f32 %v328_v57  ;;  %v449_v57 = vsub.s32 6, %v992_v12 }
 0x127   :  { %v768_v58 = vpop.eup %767 }
 0x128   :  { %v337_v59 = vsel %vm82_vm1, %v768_v58, 0.0 }
 0x129   :  { %v770_v60 = vpop.eup %769  ;;  %338 = vadd.xlane.f32.xlu0 %v337_v59 }
 0x12a   :  { %v772_v61 = vpop.eup %771  ;;  %v343_v62 = vsel %vm82_vm1, %v770_v60, 0.0 }
 0x12b   :  { %v774_v63 = vpop.eup %773  ;;  %344 = vadd.xlane.f32.xlu1 %v343_v62  ;;  %v340_v0 = vsel %vm82_vm1, %v772_v61, 0.0  ;;  %v453_v61 = vsub.s32 7, %v992_v12 }
 0x12c   :  { %v776_v1 = vpop.eup %775  ;;  %v346_v2 = vsel %vm82_vm1, %v774_v63, 0.0 }
 0x12d   :  { %341 = vadd.xlane.f32.xlu0 %v340_v0  ;;  %v778_v3 = vpop.eup %777  ;;  %v349_v4 = vsel %vm82_vm1, %v776_v1, 0.0 }
 0x12e   :  { %v780_v5 = vpop.eup %779  ;;  %v352_v6 = vsel %vm82_vm1, %v778_v3, 0.0 }
 0x12f   :  { %347 = vadd.xlane.f32.xlu1 %v346_v2  ;;  %v782_v7 = vpop.eup %781  ;;  %v355_v8 = vsel %vm82_vm1, %v780_v5, 0.0 }
 0x130   :  { %v358_v9 = vsel %vm82_vm1, %v782_v7, 0.0 }
 0x131   :  { %350 = vadd.xlane.f32.xlu0 %v349_v4 }
 0x133   :  { %353 = vadd.xlane.f32.xlu1 %v352_v6 }
 0x135   :  { %356 = vadd.xlane.f32.xlu0 %v355_v8 }
 0x137   :  { %359 = vadd.xlane.f32.xlu1 %v358_v9 }
 0x1b6   :  { %v339_v13 = vpop.xlane.xlu0 %338 }
 0x1b7   :  { %v374_v17 = vrot.slane %v339_v13, %v1019_v14 }
 0x1b8   :  { %v345_v15 = vpop.xlane.xlu1 %344 }
 0x1b9   :  { %v382_v19 = vrot.slane %v345_v15, %v1019_v14 }
 0x1ba   :  { %v342_v16 = vpop.xlane.xlu0 %341 }
 0x1bb   :  { %v378_v18 = vrot.slane %v342_v16, %v1019_v14 }
 0x1bc   :  { %v348_v20 = vpop.xlane.xlu1 %347 }
 0x1bd   :  { %v404_v21 = vsel %vm403_vm2, %v378_v18, %v374_v17  ;;  %v386_v10 = vrot.slane %v348_v20, %v1019_v14 }
 0x1be   :  { %v406_v22 = vsel %vm405_vm3, %v382_v19, %v404_v21  ;;  %v351_v23 = vpop.xlane.xlu0 %350 }
 0x1bf   :  { %v408_v25 = vsel %vm407_vm4, %v386_v10, %v406_v22  ;;  %v390_v26 = vrot.slane %v351_v23, %v1019_v14 }
 0x1c0   :  { %v354_v27 = vpop.xlane.xlu1 %353 }
 0x1c1   :  { %v410_v28 = vsel %vm409_vm5, %v390_v26, %v408_v25  ;;  %v394_v29 = vrot.slane %v354_v27, %v1019_v14 }
 0x1c2   :  { %v357_v30 = vpop.xlane.xlu0 %356 }
 0x1c3   :  { %v398_v31 = vrot.slane %v357_v30, %v1019_v14  ;;  %v412_v32 = vsel %vm411_vm6, %v394_v29, %v410_v28 }
 0x1c4   :  { %v360_v33 = vpop.xlane.xlu1 %359 }
 0x1c5   :  { %v402_v34 = vrot.slane %v360_v33, %v1019_v14  ;;  %v414_v35 = vsel %vm413_vm7, %v398_v31, %v412_v32 }
 0x1c7   :  { %v416_v36 = vsel %vm415_vm8, %v402_v34, %v414_v35 }
 0x1c8   :  { %v419_v37 = vsel %vm418_vm9, %v416_v36, -inf }
 0x1c9   :  { %420 = vmax.xlane.f32.xlu0 %v419_v37 }
 0x256   :  { %v421_v42 = vpop.xlane.xlu0 %420 }
 0x257   :  { %v426_v43 = vrot.slane %v421_v42, %v999_v24  ;;  %v430_v44 = vrot.slane %v421_v42, %v429_v39  ;;  %v434_v45 = vrot.slane %v421_v42, %v433_v40  ;;  %v438_v47 = vrot.slane %v421_v42, %v437_v41 }
 0x258   :  { %v442_v54 = vrot.slane %v421_v42, %v441_v46  ;;  %v446_v58 = vrot.slane %v421_v42, %v445_v53  ;;  %v450_v62 = vrot.slane %v421_v42, %v449_v57  ;;  %v454_v3 = vrot.slane %v421_v42, %v453_v61 }
 0x259   :  { %v463_v48 = vsub.f32 %v339_v13, %v426_v43  ;;  %v464_v49 = vsub.f32 %v342_v16, %v430_v44  ;;  %v465_v50 = vsub.f32 %v345_v15, %v434_v45  ;;  %v466_v55 = vsub.f32 %v348_v20, %v438_v47 }
 0x25a   :  { %v467_v59 = vsub.f32 %v351_v23, %v442_v54  ;;  %v468_v63 = vsub.f32 %v354_v27, %v446_v58  ;;  %v469_v4 = vsub.f32 %v357_v30, %v450_v62  ;;  %v470_v7 = vsub.f32 %v360_v33, %v454_v3 }
 0x25b   :  { %v471_v51 = vmul.f32 1.442695, %v463_v48  ;;  %v473_v52 = vmul.f32 1.442695, %v464_v49  ;;  %v475_v56 = vmul.f32 1.442695, %v465_v50 }
 0x25c   :  { %v477_v60 = vmul.f32 1.442695, %v466_v55  ;;  %v479_v0 = vmul.f32 1.442695, %v467_v59  ;;  %v481_v5 = vmul.f32 1.442695, %v468_v63 }
 0x25d   :  { %783 = vpow2.f32 %v471_v51  ;;  %v483_v8 = vmul.f32 1.442695, %v469_v4  ;;  %v485_v11 = vmul.f32 1.442695, %v470_v7 }
 0x25e   :  { %785 = vpow2.f32 %v473_v52 }
 0x25f   :  { %787 = vpow2.f32 %v475_v56 }
 0x260   :  { %789 = vpow2.f32 %v477_v60 }
 0x261   :  { %791 = vpow2.f32 %v479_v0 }
 0x262   :  { %793 = vpow2.f32 %v481_v5 }
 0x263   :  { %795 = vpow2.f32 %v483_v8 }
 0x264   :  { %797 = vpow2.f32 %v485_v11 }
 0x267   :  { %v784_v1 = vpop.eup %783 }
 0x268   :  { %v1057_v2 = vpop.eup %785  ;;  %496 = vperm.xlu1 %759, %v784_v1  }
 0x269   :  { %499 = vperm.xlu0 %760, %v1057_v2   ;;  %v1062_v6 = vpop.eup %787 }
 0x26a   :  { %v1065_v9 = vpop.eup %789 }
 0x26b   :  { %v1068_v13 = vpop.eup %791 }
 0x26c   :  { %502 = vperm.xlu1 %759, %v1062_v6   ;;  %v1071_v15 = vpop.eup %793 }
 0x26d   :  { %v1074_v16 = vpop.eup %795 }
 0x26e   :  { %v1077_v17 = vpop.eup %797 }
 0x270   :  { %505 = vperm.xlu1 %759, %v1065_v9  }
 0x274   :  { %508 = vperm.xlu1 %759, %v1068_v13  }
 0x278   :  { %511 = vperm.xlu1 %759, %v1071_v15  }
 0x27c   :  { %514 = vperm.xlu1 %759, %v1074_v16  }
 0x280   :  { %517 = vperm.xlu1 %759, %v1077_v17  }
 0x2e7   :  { %v497_v18 = vpop.permute.xlu1 %496 }
 0x2e8   :  { %v500_v10 = vpop.permute.xlu0 %499  ;;  %v522_v25 = vrot.slane %v497_v18, %v1019_v14 }
 0x2e9   :  { %v526_v23 = vrot.slane %v500_v10, %v1019_v14 }
 0x2eb   :  { %v503_v19 = vpop.permute.xlu1 %502  ;;  %v551_v30 = vsel %vm403_vm2, %v526_v23, %v522_v25 }
 0x2ec   :  { %v530_v26 = vrot.slane %v503_v19, %v1019_v14 }
 0x2ee   :  { %v552_v32 = vsel %vm405_vm3, %v530_v26, %v551_v30 }
 0x2ef   :  { %v506_v20 = vpop.permute.xlu1 %505 }
 0x2f0   :  { %v534_v27 = vrot.slane %v506_v20, %v1019_v14 }
 0x2f2   :  { %v553_v34 = vsel %vm407_vm4, %v534_v27, %v552_v32 }
 0x2f3   :  { %v509_v21 = vpop.permute.xlu1 %508 }
 0x2f4   :  { %v538_v28 = vrot.slane %v509_v21, %v1019_v14 }
 0x2f6   :  { %v554_v35 = vsel %vm409_vm5, %v538_v28, %v553_v34 }
 0x2f7   :  { %v512_v22 = vpop.permute.xlu1 %511 }
 0x2f8   :  { %v542_v31 = vrot.slane %v512_v22, %v1019_v14 }
 0x2fa   :  { %v555_v37 = vsel %vm411_vm6, %v542_v31, %v554_v35 }
 0x2fb   :  { %v515_v29 = vpop.permute.xlu1 %514 }
 0x2fc   :  { %v546_v33 = vrot.slane %v515_v29, %v1019_v14 }
 0x2fe   :  { %v556_v42 = vsel %vm413_vm7, %v546_v33, %v555_v37 }
 0x2ff   :  { %v518_v36 = vpop.permute.xlu1 %517 }
 0x300   :  { %v550_v38 = vrot.slane %v518_v36, %v1019_v14 }
 0x302   :  { %v557_v43 = vsel %vm415_vm8, %v550_v38, %v556_v42 }
 0x303   :  { %v559_v44 = vsel %vm418_vm9, %v557_v43, 0.0 }
 0x304   :  { %560 = vadd.xlane.f32.xlu1 %v559_v44 }
 0x391   :  { %v561_v45 = vpop.xlane.xlu1 %560 }
 0x392   :  { %v566_v47 = vrot.slane %v561_v45, %v999_v24  ;;  %v570_v48 = vrot.slane %v561_v45, %v429_v39  ;;  %v574_v49 = vrot.slane %v561_v45, %v433_v40  ;;  %v578_v50 = vrot.slane %v561_v45, %v437_v41 }
 0x393   :  { %v582_v52 = vrot.slane %v561_v45, %v441_v46  ;;  %v586_v24 = vrot.slane %v561_v45, %v445_v53  ;;  %v590_v40 = vrot.slane %v561_v45, %v449_v57  ;;  %v594_v46 = vrot.slane %v561_v45, %v453_v61 }
 0x394   :  { %799 = vrcp.f32 %v566_v47 }
 0x395   :  { %801 = vrcp.f32 %v570_v48 }
 0x396   :  { %803 = vrcp.f32 %v574_v49 }
 0x397   :  { %805 = vrcp.f32 %v578_v50 }
 0x398   :  { %807 = vrcp.f32 %v582_v52 }
 0x399   :  { %809 = vrcp.f32 %v586_v24 }
 0x39a   :  { %811 = vrcp.f32 %v590_v40 }
 0x39b   :  { %813 = vrcp.f32 %v594_v46 }
 0x39e   :  { %v800_v51 = vpop.eup %799 }
 0x39f   :  { %v604_v54 = vmul.f32 %v800_v51, %v784_v1  ;;  %v802_v55 = vpop.eup %801 }
 0x3a0   :  { %v606_v39 = vmul.f32 %v802_v55, %v1057_v2  ;;  %v804_v56 = vpop.eup %803 }
 0x3a1   :  { %628 = vperm.xlu0 %760, %v604_v54   ;;  %v608_v41 = vmul.f32 %v804_v56, %v1062_v6  ;;  %v806_v58 = vpop.eup %805 }
 0x3a2   :  { %v610_v59 = vmul.f32 %v806_v58, %v1065_v9  ;;  %v808_v60 = vpop.eup %807 }
 0x3a3   :  { %v612_v53 = vmul.f32 %v808_v60, %v1068_v13  ;;  %v810_v62 = vpop.eup %809 }
 0x3a4   :  { %v614_v63 = vmul.f32 %v810_v62, %v1071_v15  ;;  %v812_v57 = vpop.eup %811 }
 0x3a5   :  { %631 = vperm.xlu0 %760, %v606_v39   ;;  %v616_v0 = vmul.f32 %v812_v57, %v1074_v16  ;;  %v814_v1 = vpop.eup %813 }
 0x3a6   :  { %v618_v12 = vmul.f32 %v814_v1, %v1077_v17 }
 0x3a9   :  { %634 = vperm.xlu0 %760, %v608_v41  }
 0x3ad   :  { %637 = vperm.xlu0 %760, %v610_v59  }
 0x3b1   :  { %640 = vperm.xlu0 %760, %v612_v53  }
 0x3b5   :  { %643 = vperm.xlu0 %760, %v614_v63  }
 0x3b9   :  { %646 = vperm.xlu0 %760, %v616_v0  }
 0x3bd   :  { %649 = vperm.xlu0 %760, %v618_v12  }
 0x420   :  { %v629_v61 = vpop.permute.xlu0 %628 }
 0x421   :  { %v654_v9 = vrot.slane %v629_v61, %v1019_v14 }
 0x424   :  { %v632_v2 = vpop.permute.xlu0 %631 }
 0x425   :  { %v658_v7 = vrot.slane %v632_v2, %v1019_v14 }
 0x427   :  { %v683_v16 = vsel %vm403_vm2, %v658_v7, %v654_v9 }
 0x428   :  { %v635_v3 = vpop.permute.xlu0 %634 }
 0x429   :  { %v662_v8 = vrot.slane %v635_v3, %v1019_v14 }
 0x42b   :  { %v684_v18 = vsel %vm405_vm3, %v662_v8, %v683_v16 }
 0x42c   :  { %v638_v4 = vpop.permute.xlu0 %637 }
 0x42d   :  { %v666_v11 = vrot.slane %v638_v4, %v1019_v14 }
 0x42f   :  { %v685_v20 = vsel %vm407_vm4, %v666_v11, %v684_v18 }
 0x430   :  { %v641_v5 = vpop.permute.xlu0 %640 }
 0x431   :  { %v670_v13 = vrot.slane %v641_v5, %v1019_v14 }
 0x433   :  { %v686_v21 = vsel %vm409_vm5, %v670_v13, %v685_v20 }
 0x434   :  { %v644_v6 = vpop.permute.xlu0 %643 }
 0x435   :  { %v674_v17 = vrot.slane %v644_v6, %v1019_v14 }
 0x437   :  { %v687_v22 = vsel %vm411_vm6, %v674_v17, %v686_v21 }
 0x438   :  { %v647_v15 = vpop.permute.xlu0 %646 }
 0x439   :  { %v678_v19 = vrot.slane %v647_v15, %v1019_v14 }
 0x43b   :  { %v688_v25 = vsel %vm413_vm7, %v678_v19, %v687_v22 }
 0x43c   :  { %v650_v10 = vpop.permute.xlu0 %649 }
 0x43d   :  { %v682_v23 = vrot.slane %v650_v10, %v1019_v14 }
 0x43f   :  { %v689_v26 = vsel %vm415_vm8, %v682_v23, %v688_v25 }
 0x440   :  { %691 = vst.msk [vmem:[#allocation8] sm:$0xff] %vm418_vm9, %v689_v26 }
 0x441   :  { %892 = shalt.err (!%p889_p0)
}
 0x442   :  { %s893_s30 = scalar_lea.hbm %s1150_s4, 128 }
 0x443   :  { %p894_p1 = scmp.ne.s32.totalorder %s1150_s4, %s893_s30  ;;  %p897_p2 = scmp.lt.u32.totalorder %s893_s30, %s1150_s4 }
 0x445   :  { %p899_p3 = pnand %p897_p2, %p894_p1 }
 0x447   :  { %902 = shalt.err (!%p899_p3)
}
 0x448   :  { %701 = dma.vmem_to_hbm [thread:$0]  %s699_s26, 128, %s1150_s4, [#allocation4]  }
 0x449   :  { %907 = dma.done.wait [#allocation4], 128  }
 0x44a   :  { %908 = vsyncadd [#allocation4], 4294967168 }
 0x44b   :  { %705 = vsyncpa [#allocation3], 1 }
 0x44c   :  { %706 = vsyncpa [#allocation6], 1 }
 0x44d   :  { %707 = vsyncpa [#allocation4], 1 }

</bundles_post_ra>
